<compile_context>
chip_gen: v6e
topology: v6e:2x2x1
jax: 0.10.0
libtpu: 0.0.40
codegen_flags: <defaults>
</compile_context>

<pallas_src>
import functools

import numpy as np
import jax
import jax.numpy as jnp
from jax import lax
from jax.experimental import pallas as pl
from jax.experimental.pallas import tpu as pltpu


def _temporal_block_kernel(x_ref, w1_ref, w2_ref, wres_ref, p_ref, out_ref,
                           *, K, dilation, C_in, C_out, Lp, has_downsample):
    """One lane tile (NB whole batch elements = NB*Lp lanes) per grid step.

    x_ref   : (C_in, NB*Lp)      channel-major input tile (MXU dtype)
    w1_ref  : (K, C_out, C_in)   conv1 taps (tap k pairs with x shifted right
                                 by (K-1-k)*dilation)
    w2_ref  : (K, C_out, C_out)  conv2 taps
    wres_ref: (C_out, C_in)      1x1 downsample weight (unused if identity skip)
    p_ref   : (C_out, 6)         f32 columns [b1 | b2 | b_res | a1 | a2 | a_out]
    out_ref : (C_out, NB*Lp)
    """
    LT = out_ref.shape[-1]
    f32 = jnp.float32

    b1, b2, br = p_ref[:, 0:1], p_ref[:, 1:2], p_ref[:, 2:3]
    a1, a2, ao = p_ref[:, 3:4], p_ref[:, 4:5], p_ref[:, 5:6]

    x = x_ref[...]

    # Per-segment column index (each Lp-wide lane segment is one batch
    # element).  After a right lane-rotate by s we zero the first s columns of
    # every segment: that is the causal left pad, and it simultaneously kills
    # the rotate wrap-around and any cross-batch-segment leakage.
    col_in = lax.broadcasted_iota(jnp.int32, (C_in, LT), 1) % Lp
    col_out = lax.broadcasted_iota(jnp.int32, (C_out, LT), 1) % Lp

    def causal_tap(v, col, s):
        if s == 0:
            return v
        rolled = pltpu.roll(v, s, axis=1)
        return jnp.where(col >= s, rolled, jnp.zeros_like(rolled))

    # ---- conv1: in-vreg causal im2col, K accumulating MXU dots (f32 acc) ----
    h = jnp.zeros((C_out, LT), f32)
    for k in range(K):
        tap = causal_tap(x, col_in, (K - 1 - k) * dilation)
        h = h + jnp.dot(w1_ref[k], tap, preferred_element_type=f32)
    h = h + b1
    h = jnp.where(h > 0, h, a1 * h)                  # PReLU1 (dropout1 = identity)

    # ---- residual: 1x1 conv on the same x tile, or exact identity skip ----
    if has_downsample:
        res = jnp.dot(wres_ref[...], x, preferred_element_type=f32) + br
    else:
        res = x.astype(f32)                          # C_in == C_out

    # ---- conv2: same in-vreg tap build on h (single cast to the MXU dtype) ----
    hm = h.astype(w2_ref.dtype)
    h2 = jnp.zeros((C_out, LT), f32)
    for k in range(K):
        tap = causal_tap(hm, col_out, (K - 1 - k) * dilation)
        h2 = h2 + jnp.dot(w2_ref[k], tap, preferred_element_type=f32)
    h2 = h2 + b2
    h2 = jnp.where(h2 > 0, h2, a2 * h2)              # PReLU2 (dropout2 = identity)

    o = h2 + res
    o = jnp.where(o > 0, o, ao * o)                  # final PReLU
    out_ref[...] = o.astype(out_ref.dtype)


def _vmem_capacity_bytes():
    try:
        return int(pltpu.get_tpu_info().vmem_capacity_bytes)
    except Exception:
        return 64 * 1024 * 1024          # conservative: v7x per-TensorCore VMEM


def _per_lane_vmem_bytes(C_in, C_out, in_bytes, out_bytes):
    """Rough VMEM bytes per lane column of one tile: double-buffered I/O plus
    the kernel's f32 accumulators / rolled-tap / mask temporaries."""
    return (2 * C_in * in_bytes                      # x tile, double buffered
            + 2 * C_out * out_bytes                  # out tile, double buffered
            + 4 * 2 * C_out                          # f32 accumulator + residual
            + in_bytes * max(C_in, C_out)            # one rolled/masked tap
            + 4 * (C_in + C_out))                    # int32 column masks


def _pick_batch_tile(N, Lp, per_lane_bytes, vmem_budget, max_lanes=4096):
    """Whole batch elements per grid step: the largest lane-dense tile that
    fits the VMEM budget while keeping >=2 grid steps (>=4 when the batch
    allows, so each of v7x's 2 TensorCores still gets >=2 pipelined steps)."""
    min_steps = 4 if N >= 4 else (2 if N >= 2 else 1)
    best = 1
    for nb in range(1, N + 1):
        if N % nb:
            continue
        if N // nb < min_steps:
            continue
        lt = nb * Lp
        if lt > max_lanes or lt * per_lane_bytes > vmem_budget:
            continue
        best = nb
    return best


def temporal_block_forward_cm(x_cm, params, *, kernel_size, stride, dilation,
                              padding, batch, seg_len, mxu_dtype=jnp.bfloat16,
                              out_dtype=None, batch_tile=None):
    """Channel-major TemporalBlock core.

    x_cm : (C_in, batch*seg_len); each contiguous seg_len-column segment is one
           batch element, seg_len a multiple of 128; the padded tail beyond the
           valid length may hold anything (causal taps never move data left).
    params = (w1, b1, a1, w2, b2, a2, wd, bd, ao); wd/bd may be None
           (identity skip, requires C_in == C_out).
    Returns (C_out, batch*seg_len) in out_dtype (default x_cm.dtype).  Chain
    stacked TemporalBlocks in this layout (bf16 intermediates) and only convert
    to/from NCW at the model boundary.
    """
    # TODO(synk): only stride=1, padding=(K-1)*dilation (standard TCN block).
    assert stride == 1
    assert padding == (kernel_size - 1) * dilation

    w1, b1, a1, w2, b2, a2, wd, bd, ao = params
    C_out, C_in, K = w1.shape[0], w1.shape[1], kernel_size
    N, Lp = batch, seg_len
    assert Lp % 128 == 0 and x_cm.shape == (C_in, N * Lp)
    assert padding < Lp, "receptive field must fit inside one (padded) segment"

    if out_dtype is None:
        out_dtype = x_cm.dtype
    in_bytes = np.dtype(mxu_dtype).itemsize
    out_bytes = np.dtype(out_dtype).itemsize

    cap = _vmem_capacity_bytes()
    per_lane = _per_lane_vmem_bytes(C_in, C_out, in_bytes, out_bytes)
    NB = batch_tile if batch_tile is not None else _pick_batch_tile(
        N, Lp, per_lane, vmem_budget=cap // 2)
    assert N % NB == 0
    LT = NB * Lp
    vmem_limit = int(min(cap, max(32 << 20, 2 * per_lane * LT)))

    # ---- weight packing: tap-major (K, C_out, C), plus one small f32 block of
    # biases and (channel-broadcast) PReLU slopes.
    W1p = jnp.transpose(w1, (2, 0, 1)).astype(mxu_dtype)        # (K, C_out, C_in)
    W2p = jnp.transpose(w2, (2, 0, 1)).astype(mxu_dtype)        # (K, C_out, C_out)
    has_downsample = wd is not None
    if has_downsample:
        Wres = wd[:, :, 0].astype(mxu_dtype)                    # (C_out, C_in)
        b_res = bd.astype(jnp.float32)
    else:
        assert C_in == C_out, "identity skip needs matching channel counts"
        Wres = jnp.zeros((C_out, C_in), mxu_dtype)              # unused dummy
        b_res = jnp.zeros((C_out,), jnp.float32)

    ones_c = jnp.ones((C_out,), jnp.float32)
    p_pack = jnp.stack(
        [b1.astype(jnp.float32), b2.astype(jnp.float32), b_res,
         jnp.asarray(a1, jnp.float32) * ones_c,
         jnp.asarray(a2, jnp.float32) * ones_c,
         jnp.asarray(ao, jnp.float32) * ones_c], axis=1)        # (C_out, 6)

    kernel = functools.partial(
        _temporal_block_kernel, K=K, dilation=dilation, C_in=C_in, C_out=C_out,
        Lp=Lp, has_downsample=has_downsample)

    out = pl.pallas_call(
        kernel,
        out_shape=jax.ShapeDtypeStruct((C_out, N * Lp), out_dtype),
        grid=(N // NB,),
        in_specs=[
            pl.BlockSpec((C_in, LT), lambda i: (0, i)),            # x (streamed)
            # Constant-index blocks below are DMA'd once and reused each step.
            pl.BlockSpec((K, C_out, C_in), lambda i: (0, 0, 0)),   # conv1 taps
            pl.BlockSpec((K, C_out, C_out), lambda i: (0, 0, 0)),  # conv2 taps
            pl.BlockSpec((C_out, C_in), lambda i: (0, 0)),         # 1x1 residual
            pl.BlockSpec((C_out, 6), lambda i: (0, 0)),            # biases+slopes
        ],
        out_specs=pl.BlockSpec((C_out, LT), lambda i: (0, i)),
        compiler_params=pltpu.CompilerParams(
            dimension_semantics=("parallel",),
            vmem_limit_bytes=vmem_limit),
    )(x_cm.astype(mxu_dtype), W1p, W2p, Wres, p_pack)
    return out


def _to_channel_major(x, Lp, dtype):
    """(N, C, L) f32 -> zero-padded, dtype-cast channel-major (C, N*Lp)."""
    N, C, L = x.shape
    x = x.astype(dtype)                       # cast before the relayout
    if Lp != L:
        x = jnp.pad(x, ((0, 0), (0, 0), (0, Lp - L)))
    return jnp.transpose(x, (1, 0, 2)).reshape(C, N * Lp)


def _from_channel_major(x_cm, N, Lp, L):
    """(C, N*Lp) -> (N, C, L)."""
    C = x_cm.shape[0]
    out = jnp.transpose(x_cm.reshape(C, N, Lp), (1, 0, 2))
    return out[:, :, :L] if Lp != L else out


def temporal_block_forward(x, params, *, kernel_size, stride, dilation, padding,
                           mxu_dtype=jnp.bfloat16, batch_tile=None):
    """NCW-in / NCW-out wrapper matching the PyTorch module's interface."""
    N, C_in, L = x.shape
    Lp = ((L + 127) // 128) * 128
    x_cm = _to_channel_major(x, Lp, mxu_dtype)
    out_cm = temporal_block_forward_cm(
        x_cm, params, kernel_size=kernel_size, stride=stride, dilation=dilation,
        padding=padding, batch=N, seg_len=Lp, mxu_dtype=mxu_dtype,
        out_dtype=x.dtype, batch_tile=batch_tile)
    return _from_channel_major(out_cm, N, Lp, L)


def _reference_forward(x, params, *, dilation, padding):
    """Pure-JAX reference mirroring the PyTorch module (eval mode)."""
    w1, b1, a1, w2, b2, a2, wd, bd, ao = params
    L = x.shape[2]

    def prelu(v, a):
        return jnp.where(v > 0, v, a * v)

    dn1 = lax.conv_dimension_numbers(x.shape, w1.shape, ('NCH', 'OIH', 'NCH'))
    y = lax.conv_general_dilated(x, w1, (1,), [(padding, padding)],
                                 rhs_dilation=(dilation,), dimension_numbers=dn1)
    y = y + b1[None, :, None]
    y = y[:, :, :L]                       # Chomp1d
    y = prelu(y, a1)                      # dropout1 = identity

    dn2 = lax.conv_dimension_numbers(y.shape, w2.shape, ('NCH', 'OIH', 'NCH'))
    z = lax.conv_general_dilated(y, w2, (1,), [(padding, padding)],
                                 rhs_dilation=(dilation,), dimension_numbers=dn2)
    z = z + b2[None, :, None]
    z = z[:, :, :L]                       # Chomp1d
    z = prelu(z, a2)                      # dropout2 = identity

    if wd is None:
        res = x
    else:
        res = jnp.einsum('oi,nil->nol', wd[:, :, 0], x) + bd[None, :, None]
    return prelu(z + res, ao)


if __name__ == "__main__":
    # Small shapes consistent with the module; L deliberately not a multiple
    # of 128 to exercise the pad/crop path.
    N, C_in, C_mid, L = 4, 8, 16, 100
    K, stride = 3, 1
    d1, d2 = 2, 4                                  # two stacked TCN levels
    p1, p2 = (K - 1) * d1, (K - 1) * d2

    key = jax.random.PRNGKey(0)
    ks = jax.random.split(key, 4)
    x = jax.random.normal(ks[0], (N, C_in, L), jnp.float32)

    def make_params(k, cin, cout, with_downsample):
        kk = jax.random.split(k, 6)
        w1 = 0.01 * jax.random.normal(kk[0], (cout, cin, K), jnp.float32)
        b1 = 0.10 * jax.random.normal(kk[1], (cout,), jnp.float32)
        w2 = 0.01 * jax.random.normal(kk[2], (cout, cout, K), jnp.float32)
        b2 = 0.10 * jax.random.normal(kk[3], (cout,), jnp.float32)
        if with_downsample:
            wd = 0.01 * jax.random.normal(kk[4], (cout, cin, 1), jnp.float32)
            bd = 0.10 * jax.random.normal(kk[5], (cout,), jnp.float32)
        else:
            wd, bd = None, None
        return (w1, b1, jnp.float32(0.25), w2, b2, jnp.float32(0.25),
                wd, bd, jnp.float32(0.25))

    params1 = make_params(ks[1], C_in, C_mid, True)     # 8 -> 16, 1x1 downsample
    params2 = make_params(ks[2], C_mid, C_mid, False)   # 16 -> 16, identity skip

    ref1 = _reference_forward(x, params1, dilation=d1, padding=p1)
    ref2 = _reference_forward(ref1, params2, dilation=d2, padding=p2)

    # 1) f32 MXU operands, block with 1x1 downsample: tight match required.
    out1 = temporal_block_forward(x, params1, kernel_size=K, stride=stride,
                                  dilation=d1, padding=p1, mxu_dtype=jnp.float32)
    out1 = jax.block_until_ready(out1)
    assert out1.shape == (N, C_mid, L)
    assert jnp.allclose(out1, ref1, rtol=1e-4, atol=1e-5), \
        f"f32 (downsample) max abs err {jnp.max(jnp.abs(out1 - ref1))}"

    # 2) f32, identity-skip block (no downsample): tight match required.
    out2 = temporal_block_forward(ref1, params2, kernel_size=K, stride=stride,
                                  dilation=d2, padding=p2, mxu_dtype=jnp.float32)
    out2 = jax.block_until_ready(out2)
    assert out2.shape == (N, C_mid, L)
    assert jnp.allclose(out2, ref2, rtol=1e-4, atol=1e-5), \
        f"f32 (identity skip) max abs err {jnp.max(jnp.abs(out2 - ref2))}"

    # 3) Performance path: two blocks chained in channel-major layout with a
    #    bf16 intermediate (no NCW relayout between blocks), bf16 MXU operands.
    Lp = ((L + 127) // 128) * 128
    x_cm = _to_channel_major(x, Lp, jnp.bfloat16)
    h_cm = temporal_block_forward_cm(
        x_cm, params1, kernel_size=K, stride=stride, dilation=d1, padding=p1,
        batch=N, seg_len=Lp, mxu_dtype=jnp.bfloat16, out_dtype=jnp.bfloat16)
    o_cm = temporal_block_forward_cm(
        h_cm, params2, kernel_size=K, stride=stride, dilation=d2, padding=p2,
        batch=N, seg_len=Lp, mxu_dtype=jnp.bfloat16, out_dtype=jnp.float32)
    out_chain = jax.block_until_ready(_from_channel_major(o_cm, N, Lp, L))
    assert out_chain.shape == (N, C_mid, L)
    assert jnp.allclose(out_chain, ref2, rtol=5e-2, atol=1e-2), \
        f"bf16 chained max abs err {jnp.max(jnp.abs(out_chain - ref2))}"

    print("KERNEL_OK")
</pallas_src>

<mosaic_0001>
module attributes {stable_mosaic.version = 11 : i64} {
  func.func @_temporal_block_kernel(%arg0: i32, %arg1: memref<8x128xf32, #tpu.memory_space<vmem>>, %arg2: memref<3x16x8xf32, #tpu.memory_space<vmem>>, %arg3: memref<3x16x16xf32, #tpu.memory_space<vmem>>, %arg4: memref<16x8xf32, #tpu.memory_space<vmem>>, %arg5: memref<16x6xf32, #tpu.memory_space<vmem>>, %arg6: memref<16x128xf32, #tpu.memory_space<vmem>>) attributes {dimension_semantics = [#tpu.dimension_semantics<parallel>], iteration_bounds = array<i64: 4>, scalar_prefetch = 0 : i64, scratch_operands = 0 : i64, tpu.core_type = #tpu.core_type<tc>, window_params = [{transform_indices = @transform_0, window_bounds = array<i64: 8, 128>}, {pipeline_mode = #tpu.pipeline_mode<synchronous>, transform_indices = @transform_1, window_bounds = array<i64: 3, 16, 8>}, {pipeline_mode = #tpu.pipeline_mode<synchronous>, transform_indices = @transform_2, window_bounds = array<i64: 3, 16, 16>}, {pipeline_mode = #tpu.pipeline_mode<synchronous>, transform_indices = @transform_3, window_bounds = array<i64: 16, 8>}, {pipeline_mode = #tpu.pipeline_mode<synchronous>, transform_indices = @transform_4, window_bounds = array<i64: 16, 6>}, {transform_indices = @transform_5, window_bounds = array<i64: 16, 128>}]} {
    %c0 = arith.constant 0 : index
    %c0_0 = arith.constant 0 : index
    %0 = vector.load %arg5[%c0, %c0_0] : memref<16x6xf32, #tpu.memory_space<vmem>>, vector<16x1xf32>
    %c0_1 = arith.constant 0 : index
    %c1 = arith.constant 1 : index
    %1 = vector.load %arg5[%c0_1, %c1] : memref<16x6xf32, #tpu.memory_space<vmem>>, vector<16x1xf32>
    %c0_2 = arith.constant 0 : index
    %c2 = arith.constant 2 : index
    %2 = vector.load %arg5[%c0_2, %c2] : memref<16x6xf32, #tpu.memory_space<vmem>>, vector<16x1xf32>
    %c0_3 = arith.constant 0 : index
    %c3 = arith.constant 3 : index
    %3 = vector.load %arg5[%c0_3, %c3] : memref<16x6xf32, #tpu.memory_space<vmem>>, vector<16x1xf32>
    %c0_4 = arith.constant 0 : index
    %c4 = arith.constant 4 : index
    %4 = vector.load %arg5[%c0_4, %c4] : memref<16x6xf32, #tpu.memory_space<vmem>>, vector<16x1xf32>
    %c0_5 = arith.constant 0 : index
    %c5 = arith.constant 5 : index
    %5 = vector.load %arg5[%c0_5, %c5] : memref<16x6xf32, #tpu.memory_space<vmem>>, vector<16x1xf32>
    %c0_6 = arith.constant 0 : index
    %c0_7 = arith.constant 0 : index
    %6 = vector.load %arg1[%c0_6, %c0_7] : memref<8x128xf32, #tpu.memory_space<vmem>>, vector<8x128xf32>
    %7 = tpu.iota {dimensions = array<i32: 1>} : vector<8x128xi32>
    %c128_i32 = arith.constant 128 : i32
    %c0_i32 = arith.constant 0 : i32
    %8 = arith.cmpi eq, %c128_i32, %c0_i32 : i32
    %c1_i32 = arith.constant 1 : i32
    %9 = arith.select %8, %c1_i32, %c128_i32 : i32
    %10 = vector.broadcast %9 : i32 to vector<8x128xi32>
    %11 = arith.remsi %7, %10 : vector<8x128xi32>
    %c0_i32_8 = arith.constant 0 : i32
    %12 = vector.broadcast %c0_i32_8 : i32 to vector<8x128xi32>
    %13 = arith.cmpi ne, %11, %12 : vector<8x128xi32>
    %c0_i32_9 = arith.constant 0 : i32
    %14 = vector.broadcast %c0_i32_9 : i32 to vector<8x128xi32>
    %15 = arith.cmpi slt, %11, %14 : vector<8x128xi32>
    %c0_i32_10 = arith.constant 0 : i32
    %16 = arith.cmpi slt, %9, %c0_i32_10 : i32
    %17 = vector.broadcast %16 : i1 to vector<8x128xi1>
    %18 = vector.broadcast %17 : vector<8x128xi1> to vector<8x128xi1>
    %19 = arith.xori %15, %18 : vector<8x128xi1>
    %20 = arith.andi %19, %13 : vector<8x128xi1>
    %21 = vector.broadcast %9 : i32 to vector<8x128xi32>
    %22 = arith.addi %11, %21 : vector<8x128xi32>
    %23 = arith.select %20, %22, %11 : vector<8x128xi1>, vector<8x128xi32>
    %24 = tpu.iota {dimensions = array<i32: 1>} : vector<16x128xi32>
    %c128_i32_11 = arith.constant 128 : i32
    %c0_i32_12 = arith.constant 0 : i32
    %25 = arith.cmpi eq, %c128_i32_11, %c0_i32_12 : i32
    %c1_i32_13 = arith.constant 1 : i32
    %26 = arith.select %25, %c1_i32_13, %c128_i32_11 : i32
    %27 = vector.broadcast %26 : i32 to vector<16x128xi32>
    %28 = arith.remsi %24, %27 : vector<16x128xi32>
    %c0_i32_14 = arith.constant 0 : i32
    %29 = vector.broadcast %c0_i32_14 : i32 to vector<16x128xi32>
    %30 = arith.cmpi ne, %28, %29 : vector<16x128xi32>
    %c0_i32_15 = arith.constant 0 : i32
    %31 = vector.broadcast %c0_i32_15 : i32 to vector<16x128xi32>
    %32 = arith.cmpi slt, %28, %31 : vector<16x128xi32>
    %c0_i32_16 = arith.constant 0 : i32
    %33 = arith.cmpi slt, %26, %c0_i32_16 : i32
    %34 = vector.broadcast %33 : i1 to vector<16x128xi1>
    %35 = vector.broadcast %34 : vector<16x128xi1> to vector<16x128xi1>
    %36 = arith.xori %32, %35 : vector<16x128xi1>
    %37 = arith.andi %36, %30 : vector<16x128xi1>
    %38 = vector.broadcast %26 : i32 to vector<16x128xi32>
    %39 = arith.addi %28, %38 : vector<16x128xi32>
    %40 = arith.select %37, %39, %28 : vector<16x128xi1>, vector<16x128xi32>
    %cst = arith.constant 0.000000e+00 : f32
    %41 = vector.broadcast %cst : f32 to vector<16x128xf32>
    %c4_i32 = arith.constant 4 : i32
    %42 = tpu.dynamic_rotate %6 by %c4_i32 dim 1 : vector<8x128xf32>, i32 -> vector<8x128xf32>
    %c4_i32_17 = arith.constant 4 : i32
    %43 = vector.broadcast %c4_i32_17 : i32 to vector<8x128xi32>
    %44 = arith.cmpi sge, %23, %43 : vector<8x128xi32>
    %cst_18 = arith.constant 0.000000e+00 : f32
    %45 = vector.broadcast %cst_18 : f32 to vector<8x128xf32>
    %46 = arith.select %44, %42, %45 : vector<8x128xi1>, vector<8x128xf32>
    %c0_19 = arith.constant 0 : index
    %c0_20 = arith.constant 0 : index
    %c0_21 = arith.constant 0 : index
    %47 = vector.load %arg2[%c0_19, %c0_20, %c0_21] : memref<3x16x8xf32, #tpu.memory_space<vmem>>, vector<1x16x8xf32>
    %48 = vector.shape_cast %47 : vector<1x16x8xf32> to vector<16x8xf32>
    %cst_22 = arith.constant dense<0.000000e+00> : vector<16x128xf32>
    %49 = tpu.matmul %48, %46, %cst_22 {dimension_numbers = #tpu.dot_dimension_numbers<[1], [0], [0], [1], [0, 0, 1, 1], [], []>} : vector<16x8xf32>, vector<8x128xf32>, vector<16x128xf32> -> vector<16x128xf32>
    %50 = arith.addf %41, %49 : vector<16x128xf32>
    %c2_i32 = arith.constant 2 : i32
    %51 = tpu.dynamic_rotate %6 by %c2_i32 dim 1 : vector<8x128xf32>, i32 -> vector<8x128xf32>
    %c2_i32_23 = arith.constant 2 : i32
    %52 = vector.broadcast %c2_i32_23 : i32 to vector<8x128xi32>
    %53 = arith.cmpi sge, %23, %52 : vector<8x128xi32>
    %cst_24 = arith.constant 0.000000e+00 : f32
    %54 = vector.broadcast %cst_24 : f32 to vector<8x128xf32>
    %55 = arith.select %53, %51, %54 : vector<8x128xi1>, vector<8x128xf32>
    %c1_25 = arith.constant 1 : index
    %c0_26 = arith.constant 0 : index
    %c0_27 = arith.constant 0 : index
    %56 = vector.load %arg2[%c1_25, %c0_26, %c0_27] : memref<3x16x8xf32, #tpu.memory_space<vmem>>, vector<1x16x8xf32>
    %57 = vector.shape_cast %56 : vector<1x16x8xf32> to vector<16x8xf32>
    %cst_28 = arith.constant dense<0.000000e+00> : vector<16x128xf32>
    %58 = tpu.matmul %57, %55, %cst_28 {dimension_numbers = #tpu.dot_dimension_numbers<[1], [0], [0], [1], [0, 0, 1, 1], [], []>} : vector<16x8xf32>, vector<8x128xf32>, vector<16x128xf32> -> vector<16x128xf32>
    %59 = arith.addf %50, %58 : vector<16x128xf32>
    %c2_29 = arith.constant 2 : index
    %c0_30 = arith.constant 0 : index
    %c0_31 = arith.constant 0 : index
    %60 = vector.load %arg2[%c2_29, %c0_30, %c0_31] : memref<3x16x8xf32, #tpu.memory_space<vmem>>, vector<1x16x8xf32>
    %61 = vector.shape_cast %60 : vector<1x16x8xf32> to vector<16x8xf32>
    %cst_32 = arith.constant dense<0.000000e+00> : vector<16x128xf32>
    %62 = tpu.matmul %61, %6, %cst_32 {dimension_numbers = #tpu.dot_dimension_numbers<[1], [0], [0], [1], [0, 0, 1, 1], [], []>} : vector<16x8xf32>, vector<8x128xf32>, vector<16x128xf32> -> vector<16x128xf32>
    %63 = arith.addf %59, %62 : vector<16x128xf32>
    %64 = vector.broadcast %0 : vector<16x1xf32> to vector<16x128xf32>
    %65 = arith.addf %63, %64 : vector<16x128xf32>
    %cst_33 = arith.constant 0.000000e+00 : f32
    %66 = vector.broadcast %cst_33 : f32 to vector<16x128xf32>
    %67 = arith.cmpf ogt, %65, %66 : vector<16x128xf32>
    %68 = vector.broadcast %3 : vector<16x1xf32> to vector<16x128xf32>
    %69 = arith.mulf %68, %65 : vector<16x128xf32>
    %70 = arith.select %67, %65, %69 : vector<16x128xi1>, vector<16x128xf32>
    %c0_34 = arith.constant 0 : index
    %c0_35 = arith.constant 0 : index
    %71 = vector.load %arg4[%c0_34, %c0_35] : memref<16x8xf32, #tpu.memory_space<vmem>>, vector<16x8xf32>
    %cst_36 = arith.constant dense<0.000000e+00> : vector<16x128xf32>
    %72 = tpu.matmul %71, %6, %cst_36 {dimension_numbers = #tpu.dot_dimension_numbers<[1], [0], [0], [1], [0, 0, 1, 1], [], []>} : vector<16x8xf32>, vector<8x128xf32>, vector<16x128xf32> -> vector<16x128xf32>
    %73 = vector.broadcast %2 : vector<16x1xf32> to vector<16x128xf32>
    %74 = arith.addf %72, %73 : vector<16x128xf32>
    %cst_37 = arith.constant 0.000000e+00 : f32
    %75 = vector.broadcast %cst_37 : f32 to vector<16x128xf32>
    %c4_i32_38 = arith.constant 4 : i32
    %76 = tpu.dynamic_rotate %70 by %c4_i32_38 dim 1 : vector<16x128xf32>, i32 -> vector<16x128xf32>
    %c4_i32_39 = arith.constant 4 : i32
    %77 = vector.broadcast %c4_i32_39 : i32 to vector<16x128xi32>
    %78 = arith.cmpi sge, %40, %77 : vector<16x128xi32>
    %cst_40 = arith.constant 0.000000e+00 : f32
    %79 = vector.broadcast %cst_40 : f32 to vector<16x128xf32>
    %80 = arith.select %78, %76, %79 : vector<16x128xi1>, vector<16x128xf32>
    %c0_41 = arith.constant 0 : index
    %c0_42 = arith.constant 0 : index
    %c0_43 = arith.constant 0 : index
    %81 = vector.load %arg3[%c0_41, %c0_42, %c0_43] : memref<3x16x16xf32, #tpu.memory_space<vmem>>, vector<1x16x16xf32>
    %82 = vector.shape_cast %81 : vector<1x16x16xf32> to vector<16x16xf32>
    %cst_44 = arith.constant dense<0.000000e+00> : vector<16x128xf32>
    %83 = tpu.matmul %82, %80, %cst_44 {dimension_numbers = #tpu.dot_dimension_numbers<[1], [0], [0], [1], [0, 0, 1, 1], [], []>} : vector<16x16xf32>, vector<16x128xf32>, vector<16x128xf32> -> vector<16x128xf32>
    %84 = arith.addf %75, %83 : vector<16x128xf32>
    %c2_i32_45 = arith.constant 2 : i32
    %85 = tpu.dynamic_rotate %70 by %c2_i32_45 dim 1 : vector<16x128xf32>, i32 -> vector<16x128xf32>
    %c2_i32_46 = arith.constant 2 : i32
    %86 = vector.broadcast %c2_i32_46 : i32 to vector<16x128xi32>
    %87 = arith.cmpi sge, %40, %86 : vector<16x128xi32>
    %cst_47 = arith.constant 0.000000e+00 : f32
    %88 = vector.broadcast %cst_47 : f32 to vector<16x128xf32>
    %89 = arith.select %87, %85, %88 : vector<16x128xi1>, vector<16x128xf32>
    %c1_48 = arith.constant 1 : index
    %c0_49 = arith.constant 0 : index
    %c0_50 = arith.constant 0 : index
    %90 = vector.load %arg3[%c1_48, %c0_49, %c0_50] : memref<3x16x16xf32, #tpu.memory_space<vmem>>, vector<1x16x16xf32>
    %91 = vector.shape_cast %90 : vector<1x16x16xf32> to vector<16x16xf32>
    %cst_51 = arith.constant dense<0.000000e+00> : vector<16x128xf32>
    %92 = tpu.matmul %91, %89, %cst_51 {dimension_numbers = #tpu.dot_dimension_numbers<[1], [0], [0], [1], [0, 0, 1, 1], [], []>} : vector<16x16xf32>, vector<16x128xf32>, vector<16x128xf32> -> vector<16x128xf32>
    %93 = arith.addf %84, %92 : vector<16x128xf32>
    %c2_52 = arith.constant 2 : index
    %c0_53 = arith.constant 0 : index
    %c0_54 = arith.constant 0 : index
    %94 = vector.load %arg3[%c2_52, %c0_53, %c0_54] : memref<3x16x16xf32, #tpu.memory_space<vmem>>, vector<1x16x16xf32>
    %95 = vector.shape_cast %94 : vector<1x16x16xf32> to vector<16x16xf32>
    %cst_55 = arith.constant dense<0.000000e+00> : vector<16x128xf32>
    %96 = tpu.matmul %95, %70, %cst_55 {dimension_numbers = #tpu.dot_dimension_numbers<[1], [0], [0], [1], [0, 0, 1, 1], [], []>} : vector<16x16xf32>, vector<16x128xf32>, vector<16x128xf32> -> vector<16x128xf32>
    %97 = arith.addf %93, %96 : vector<16x128xf32>
    %98 = vector.broadcast %1 : vector<16x1xf32> to vector<16x128xf32>
    %99 = arith.addf %97, %98 : vector<16x128xf32>
    %cst_56 = arith.constant 0.000000e+00 : f32
    %100 = vector.broadcast %cst_56 : f32 to vector<16x128xf32>
    %101 = arith.cmpf ogt, %99, %100 : vector<16x128xf32>
    %102 = vector.broadcast %4 : vector<16x1xf32> to vector<16x128xf32>
    %103 = arith.mulf %102, %99 : vector<16x128xf32>
    %104 = arith.select %101, %99, %103 : vector<16x128xi1>, vector<16x128xf32>
    %105 = arith.addf %104, %74 : vector<16x128xf32>
    %cst_57 = arith.constant 0.000000e+00 : f32
    %106 = vector.broadcast %cst_57 : f32 to vector<16x128xf32>
    %107 = arith.cmpf ogt, %105, %106 : vector<16x128xf32>
    %108 = vector.broadcast %5 : vector<16x1xf32> to vector<16x128xf32>
    %109 = arith.mulf %108, %105 : vector<16x128xf32>
    %110 = arith.select %107, %105, %109 : vector<16x128xi1>, vector<16x128xf32>
    %c0_58 = arith.constant 0 : index
    %c0_59 = arith.constant 0 : index
    %111 = vector.load %arg6[%c0_58, %c0_59] : memref<16x128xf32, #tpu.memory_space<vmem>>, vector<16x128xf32>
    tpu.vector_store %arg6[%c0_58, %c0_59], %110 {strides = array<i32>} : memref<16x128xf32, #tpu.memory_space<vmem>>, vector<16x128xf32>,
    return
  }
  func.func @transform_0(%arg0: i32) -> (i32, i32) {
    %c0_i32 = arith.constant 0 : i32
    %c0_i32_0 = arith.constant 0 : i32
    return %c0_i32, %arg0 : i32, i32
  }
  func.func @transform_1(%arg0: i32) -> (i32, i32, i32) {
    %c0_i32 = arith.constant 0 : i32
    %c0_i32_0 = arith.constant 0 : i32
    %c0_i32_1 = arith.constant 0 : i32
    %c0_i32_2 = arith.constant 0 : i32
    return %c0_i32, %c0_i32_0, %c0_i32_1 : i32, i32, i32
  }
  func.func @transform_2(%arg0: i32) -> (i32, i32, i32) {
    %c0_i32 = arith.constant 0 : i32
    %c0_i32_0 = arith.constant 0 : i32
    %c0_i32_1 = arith.constant 0 : i32
    %c0_i32_2 = arith.constant 0 : i32
    return %c0_i32, %c0_i32_0, %c0_i32_1 : i32, i32, i32
  }
  func.func @transform_3(%arg0: i32) -> (i32, i32) {
    %c0_i32 = arith.constant 0 : i32
    %c0_i32_0 = arith.constant 0 : i32
    %c0_i32_1 = arith.constant 0 : i32
    return %c0_i32, %c0_i32_0 : i32, i32
  }
  func.func @transform_4(%arg0: i32) -> (i32, i32) {
    %c0_i32 = arith.constant 0 : i32
    %c0_i32_0 = arith.constant 0 : i32
    %c0_i32_1 = arith.constant 0 : i32
    return %c0_i32, %c0_i32_0 : i32, i32
  }
  func.func @transform_5(%arg0: i32) -> (i32, i32) {
    %c0_i32 = arith.constant 0 : i32
    %c0_i32_0 = arith.constant 0 : i32
    return %c0_i32, %arg0 : i32, i32
  }
}

</mosaic_0001>

<bundles_post_ra>
// kernel: tpu_custom_call.1
= control target key start
LH: loop header
LB: loop body
LE: loop exit
PB: predicated region body
PF: predicated region fallthrough
CT: control target
= control target key end

     0   :  { %10 = vsyncpa [#allocation3], 0  ;;  %s1484_s0 = inlined_call_operand.vmem [shape: f32[8,512], index: 0, kind: input, shape index: {}]   ;;  %s1485_s1 = inlined_call_operand.vmem [shape: f32[3,16,8], index: 1, kind: input, shape index: {}]   ;;  %s1486_s2 = inlined_call_operand.vmem [shape: f32[3,16,16], index: 2, kind: input, shape index: {}]   ;;  %s1487_s3 = inlined_call_operand.vmem [shape: f32[16,8], index: 3, kind: input, shape index: {}]   ;;  %s1488_s4 = inlined_call_operand.vmem [shape: f32[16,6], index: 4, kind: input, shape index: {}]   ;;  %s1489_s5 = inlined_call_operand.hbm [shape: f32[16,512], index: 5, kind: output, shape index: {}]  }
   0x1   :  { %12 = vsyncpa [#allocation3 + $0x1], 0  ;;  %s1266_s18 = smov 0   ;;  %s1268_s19 = smov 0  }
   0x2   :  { %s1270_s20 = smov 0   ;;  %s1272_s21 = smov 0  }
   0x3 LB: > { %s1287_s22 = sadd.s32 4294967295, %s1222_s21   ;;  %s999_s23 = sadd.s32 4294967294, %s1222_s21   ;;  %s1222_s21 = sphi %s1272_s21, %s1495_s21   ;;  %s1218_s20 = sphi %s1270_s20, %s1494_s20   ;;  %s1214_s19 = sphi %s1268_s19, %s1493_s19   ;;  %s1210_s18 = sphi %s1266_s18, %s1492_s18  }
   0x4   : > { %s1291_s24 = sadd.s32 1, %s1222_s21   ;;  %s135_s25 = sadd.s32 1, %s1218_s20 }
   0x5   : > { %s132_s26 = ssub.s32 %s1222_s21, %s1291_s24  ;;  %p145_p0 = scmp.ne.s32.totalorder %s1218_s20, %s1214_s19 }
   0x6   : > { %p133_p1 = scmp.eq.s32.totalorder %s132_s26, 0  ;;  %p146_p2 = scmp.eq.s32.totalorder %s1287_s22, 3 }
   0x7   : > { %p151_p3 = scmp.ne.s32.totalorder %s1214_s19, %s1210_s18  ;;  %p152_p4 = scmp.eq.s32.totalorder %s999_s23, 3 }
   0x8   : > { %s1302_s27 = scalar_select %p133_p1, %s1218_s20, %s135_s25  }
   0x9   : > { %p1304_p5 = por %p146_p2, %p145_p0  ;;  %p1308_p6 = por %p152_p4, %p151_p3 }
   0xa   : > { %p1002_p7 = scmp.ge.s32.totalorder %s1222_s21, 1  ;;  %p189_p8 = scmp.lt.s32.totalorder %s1222_s21, 5 }
   0xc   : > { %p190_p9 = pnand %p1002_p7, %p189_p8 }
   0xd   : > { %p216_p10 = scmp.lt.s32.totalorder (!%p190_p9), %s1287_s22, 3  ;;  %s1226_s23 = smov (!%p190_p9), 2  }
   0xe   : > { %193 = sbr.rel (%p190_p9) target bundleno = 695 (0x2b7), region = 40  ;;  %s1227_s25 = smov (!%p190_p9), 4  }
   0xf   : > { %s1034_s16 = sshll.u32 (!%p190_p9), %s1287_s22, 7 }
  0x10   : > { %s1440_s30 = scalar_lea.hbm (!%p190_p9), %s1489_s5, %s1034_s16 }
  0x13   : > { %v1005_v0 = vld [vmem:[%s1485_s1 + $0x10] sm:$0xff]  ;;  %vm250_vm0 = vcmask 64512   ;;  %v241_v1 = vld [vmem:[%s1485_s1] sm:$0xff]  ;;  %s217_s9 = scalar_select %p216_p10, %s1287_s22, 3  ;;  %v1224_v2 = vmov 0   ;;  %v1327_v3 = vld [vmem:[%s1488_s4 + $0x8] sm:$0xff]  ;;  %v223_v7 = vlaneseq }
  0x14   : > { %1063 = vmatprep.mubr.msk.f32.mxu0 %vm250_vm0, %v1005_v0  ;;  %1068 = vmatprep.mubr.msk.f32.mxu1 %vm250_vm0, %v241_v1  ;;  %v1225_v4 = vmov 3   ;;  %v1333_v5 = vld [vmem:[%s1488_s4] sm:$0xff]  ;;  %v1006_v10 = vld [vmem:[%s1485_s1 + $0x18] sm:$0xff]  ;;  %v242_v13 = vld [vmem:[%s1485_s1 + $0x8] sm:$0xff]  ;;  %vm633_vm3 = vcmask 130048   ;;  %v1228_v38 = vmov 1  }
  0x15   : > { %1152 = vset.pattern.permute.xlu1 %v1224_v2  ;;  %1153 = vset.pattern.permute.xlu0 %v1225_v4  ;;  %s1004_s12 = sshll.u32 %s217_s9, 3  ;;  %v1343_v8 = vand.u32 127, %v223_v7  ;;  %v1013_v11 = vld [vmem:[%s1485_s1 + $0x20] sm:$0xff]  ;;  %v1014_v14 = vld [vmem:[%s1485_s1 + $0x28] sm:$0xff]  ;;  %v1019_v23 = vld [vmem:[%s1486_s2 + $0x10] sm:$0xff]  ;;  %v1229_v40 = vmov 4  }
  0x16   : > { %506 = vperm.xlu1 %1152, %v1327_v3   ;;  %s219_s17 = scalar_lea.vmem %s1484_s0, %s1004_s12  ;;  %v525_v17 = vld [vmem:[%s1487_s3] sm:$0xff]  ;;  %v526_v18 = vld [vmem:[%s1487_s3 + $0x8] sm:$0xff]  ;;  %v1230_v41 = vmov 2   ;;  %v1231_v42 = vmov 5   ;;  %v1020_v47 = vld [vmem:[%s1486_s2 + $0x18] sm:$0xff]  ;;  %s213_s12 = sand.u32 1, %s1214_s19  }
  0x17   : > { %v222_v6 = vld [vmem:[%s219_s17] sm:$0xff]  ;;  %vm245_vm1 = vcmp.ge.s32.totalorder %v1343_v8, 2  ;;  %vm239_vm2 = vcmp.ge.s32.totalorder %v1343_v8, 4  ;;  %v623_v48 = vld [vmem:[%s1486_s2 + $0x8] sm:$0xff]  ;;  %s1003_s13 = sshll.u32 %s213_s12, 4  ;;  %s1444_s22 = scalar_lea.sflag [#allocation3], %s213_s12 }
  0x18   : > { %243 = vrot.lane.b32.xlu0 %v222_v6, %s1226_s23  ;;  %v622_v24 = vld [vmem:[%s1486_s2] sm:$0xff]  ;;  %v1030_v50 = vld [vmem:[%s1486_s2 + $0x28] sm:$0xff]  ;;  %s215_s14 = scalar_lea.vmem [#allocation2], %s1003_s13 }
  0x19   : > { %v1029_v49 = vld [vmem:[%s1486_s2 + $0x20] sm:$0xff]  ;;  %s937_s15 = sshll.u32 %s215_s14, 4  ;;  %s1435_s15 = int_to_ptr.vmem [resolvable:$true] %s937_s15 }
  0x1a   : > { %501 = vperm.xlu1 %1152, %v1333_v5  }
  0x1c   : > { %237 = vrot.lane.b32.xlu0 %v222_v6, %s1227_s25 }
  0x1e   : > { %1154 = vset.pattern.permute.xlu1 %v1225_v4 }
  0x1f   : > { %514 = vperm.xlu1 %1154, %v1333_v5  }
  0x20   : > { %518 = vperm.xlu0 %1153, %v1327_v3  }
  0x23   : > { %1155 = vset.pattern.permute.xlu1 %v1228_v38 }
  0x24   : > { %1156 = vset.pattern.permute.xlu0 %v1228_v38 }
  0x8a   : > { %v244_v9 = vpop.permute.xlu0 %243 }
  0x8b   : > { %1061 = vmatprep.subr.msk.mxu0 %vm245_vm1, %v244_v9 }
  0x8c   : > { %1062 = vmatpush3.msk.msra.mxu0 %vm245_vm1, %v244_v9 }
  0x8d   : > { %1064 = vmatmul.mubr.msk.f32.vlgmr.msra.gmra.mxu0 %vm250_vm0, %v1006_v10  ;;  %1071 = vmatprep.subr.mxu0 %v222_v6 }
  0x8e   : > { %v238_v12 = vpop.permute.xlu0 %237  ;;  %1072 = vmatpush3.msra.mxu0 %v222_v6  ;;  %1073 = vmatprep.mubr.msk.f32.mxu0 %vm250_vm0, %v1013_v11 }
  0x8f   : > { %1066 = vmatprep.subr.msk.mxu1 %vm239_vm2, %v238_v12 }
  0x90   : > { %1067 = vmatpush3.msk.msra.mxu1 %vm239_vm2, %v238_v12 }
  0x91   : > { %1069 = vmatmul.mubr.msk.f32.vlgmr.msra.gmra.mxu1 %vm250_vm0, %v242_v13  ;;  %1074 = vmatmul.mubr.msk.f32.vlgmr.msra.gmra.mxu0 %vm250_vm0, %v1014_v14  ;;  %v507_v16 = vpop.permute.xlu1 %506 }
  0x92   : > { %1076 = vmatprep.subr.mxu1 %v222_v6  ;;  %1078 = vmatprep.mubr.msk.f32.mxu1 %vm250_vm0, %v525_v17 }
  0x93   : > { %1077 = vmatpush3.msra.mxu1 %v222_v6  ;;  %1085 = vmatprep.mubr.msk.f32.mxu0 %vm633_vm3, %v1019_v23 }
  0x95   : > { %1079 = vmatmul.mubr.msk.f32.vlgmr.msra.gmra.mxu1 %vm250_vm0, %v526_v18  ;;  %v502_v25 = vpop.permute.xlu1 %501 }
  0x96   : > { %1092 = vmatprep.mubr.msk.f32.mxu1 %vm633_vm3, %v622_v24 }
  0x9a   : > { %v515_v33 = vpop.permute.xlu1 %514 }
  0x9b   : > { %v519_v30 = vpop.permute.xlu0 %518 }
 0x14d   : > { %v1065_v15 = vpop.f32.mrf.mxu0 }
 0x14f   : > { %v323_v19 = vpop.f32.mrf.mxu0 }
 0x151   : > { %v1070_v20 = vpop.f32.mrf.mxu1  ;;  %v1075_v21 = vpop.f32.mrf.mxu0 }
 0x152   : > { %v410_v22 = vadd.f32 %v1070_v20, %v1065_v15 }
 0x153   : > { %v404_v26 = vpop.f32.mrf.mxu1  ;;  %v488_v29 = vpop.f32.mrf.mxu0 }
 0x154   : > { %v498_v27 = vadd.f32 %v1075_v21, %v410_v22  ;;  %v405_v28 = vadd.f32 %v404_v26, %v323_v19 }
 0x155   : > { %v1080_v52 = vpop.f32.mrf.mxu1 }
 0x156   : > { %v510_v31 = vadd.f32 %v507_v16, %v498_v27  ;;  %v497_v32 = vadd.f32 %v488_v29, %v405_v28 }
 0x157   : > { %v607_v54 = vpop.f32.mrf.mxu1 }
 0x158   : > { %v509_v34 = vadd.f32 %v502_v25, %v497_v32  ;;  %v522_v35 = vmul.f32 %v519_v30, %v510_v31  ;;  %vm512_vm4 = vcmp.gt.f32.partialorder %v510_v31, 0.0 }
 0x15a   : > { %v521_v36 = vmul.f32 %v515_v33, %v509_v34  ;;  %v524_v37 = vsel %vm512_vm4, %v510_v31, %v522_v35  ;;  %vm511_vm5 = vcmp.gt.f32.partialorder %v509_v34, 0.0 }
 0x15b   : > { %618 = vrot.lane.b32.xlu0 %v524_v37, %s1227_s25  ;;  %626 = vrot.lane.b32.xlu1 %v524_v37, %s1226_s23 }
 0x15c   : > { %v523_v39 = vsel %vm511_vm5, %v509_v34, %v521_v36 }
 0x15f   : > { %616 = vrot.lane.b32.xlu0 %v523_v39, %s1227_s25  ;;  %624 = vrot.lane.b32.xlu1 %v523_v39, %s1226_s23  ;;  %s1162_s23 = scalar_lea.vmem %s1435_s15, 256  ;;  %s1232_s25 = smov [#allocation2]  }
 0x160   : > { %p1163_p11 = scmp.ne.s32.totalorder %s1435_s15, %s1162_s23  ;;  %s1166_s6 = sshll.u32 %s1232_s25, 4  ;;  %s1167_s6 = int_to_ptr.vmem [resolvable:$false] %s1166_s6 }
 0x161   : > { %s1168_s7 = scalar_lea.vmem %s1167_s6, 512  ;;  %p1169_p0 = scmp.lt.s32.totalorder %s1435_s15, %s1167_s6 }
 0x162   : > { %p1164_p12 = pnand %p1163_p11, %p1304_p5  ;;  %p1170_p1 = scmp.lt.s32.totalorder %s1168_s7, %s1162_s23 }
 0x163   : > { %883 = vperm.xlu1 %1155, %v1333_v5   ;;  %887 = vperm.xlu0 %1156, %v1327_v3  }
 0x164   : > { %p1165_p13 = pneg %p1164_p12  ;;  %p1171_p2 = por %p1170_p1, %p1169_p0 }
 0x166   : > { %p1172_p3 = pnand %p1171_p2, %p1165_p13 }
 0x167   : > { %1157 = vset.pattern.permute.xlu1 %v1229_v40  ;;  %1158 = vset.pattern.permute.xlu0 %v1230_v41 }
 0x168   : > { %895 = vperm.xlu1 %1157, %v1333_v5   ;;  %528 = vperm.xlu0 %1158, %v1333_v5  }
 0x16c   : > { %899 = vperm.xlu1 %1157, %v1327_v3   ;;  %1161 = vset.pattern.permute.xlu0 %v1231_v42 }
 0x16d   : > { %915 = vperm.xlu0 %1161, %v1327_v3  }
 0x170   : > { %1159 = vset.pattern.permute.xlu1 %v1230_v41 }
 0x171   : > { %532 = vperm.xlu1 %1159, %v1327_v3  }
 0x175   : > { %1160 = vset.pattern.permute.xlu1 %v1231_v42 }
 0x176   : > { %911 = vperm.xlu1 %1160, %v1333_v5  }
 0x1cd   : > { %v619_v43 = vpop.permute.xlu0 %618  ;;  %v627_v44 = vpop.permute.xlu1 %626 }
 0x1ce   : > { %1081 = vmatprep.subr.msk.mxu0 %vm245_vm1, %v627_v44  ;;  %1088 = vmatprep.subr.msk.mxu1 %vm239_vm2, %v619_v43 }
 0x1cf   : > { %1082 = vmatpush3.msk.msra.mxu0 %vm245_vm1, %v627_v44  ;;  %1089 = vmatpush3.msk.msra.mxu1 %vm239_vm2, %v619_v43 }
 0x1d1   : > { %v617_v45 = vpop.permute.xlu0 %616  ;;  %v625_v46 = vpop.permute.xlu1 %624 }
 0x1d2   : > { %1083 = vmatprep.subr.msk.mxu0 %vm245_vm1, %v625_v46  ;;  %1090 = vmatprep.subr.msk.mxu1 %vm239_vm2, %v617_v45 }
 0x1d3   : > { %1084 = vmatpush3.msk.msra.mxu0 %vm245_vm1, %v625_v46  ;;  %1091 = vmatpush3.msk.msra.mxu1 %vm239_vm2, %v617_v45 }
 0x1d4   : > { %1086 = vmatmul.mubr.msk.f32.vlgmr.msra.gmra.mxu0 %vm633_vm3, %v1020_v47  ;;  %1093 = vmatmul.mubr.msk.f32.vlgmr.msra.gmra.mxu1 %vm633_vm3, %v623_v48 }
 0x1d5   : > { %1095 = vmatprep.subr.mxu0 %v524_v37  ;;  %1099 = vmatprep.mubr.msk.f32.mxu0 %vm633_vm3, %v1029_v49 }
 0x1d6   : > { %1096 = vmatpush3.msra.mxu0 %v524_v37 }
 0x1d7   : > { %1097 = vmatprep.subr.mxu0 %v523_v39 }
 0x1d8   : > { %1098 = vmatpush3.msra.mxu0 %v523_v39 }
 0x1d9   : > { %1100 = vmatmul.mubr.msk.f32.vlgmr.msra.gmra.mxu0 %vm633_vm3, %v1030_v50 }
 0x1de   : > { %v884_v51 = vpop.permute.xlu1 %883  ;;  %v888_v57 = vpop.permute.xlu0 %887 }
 0x1e3   : > { %v896_v53 = vpop.permute.xlu1 %895  ;;  %v529_v2 = vpop.permute.xlu0 %528 }
 0x1e4   : > { %v608_v12 = vadd.f32 %v607_v54, %v529_v2 }
 0x1e7   : > { %v900_v58 = vpop.permute.xlu1 %899 }
 0x1e8   : > { %v916_v10 = vpop.permute.xlu0 %915 }
 0x1ec   : > { %v533_v3 = vpop.permute.xlu1 %532 }
 0x1ed   : > { %v613_v8 = vadd.f32 %v1080_v52, %v533_v3 }
 0x1f1   : > { %v912_v15 = vpop.permute.xlu1 %911 }
 0x294   : > { %v1087_v55 = vpop.f32.mrf.mxu0  ;;  %v1094_v56 = vpop.f32.mrf.mxu1 }
 0x295   : > { %v793_v61 = vadd.f32 %v1094_v56, %v1087_v55 }
 0x296   : > { %v706_v59 = vpop.f32.mrf.mxu0  ;;  %v787_v60 = vpop.f32.mrf.mxu1 }
 0x297   : > { %v788_v63 = vadd.f32 %v787_v60, %v706_v59 }
 0x299   : > { %v1101_v62 = vpop.f32.mrf.mxu0 }
 0x29a   : > { %v881_v0 = vadd.f32 %v1101_v62, %v793_v61 }
 0x29b   : > { %v871_v1 = vpop.f32.mrf.mxu0 }
 0x29c   : > { %v891_v4 = vadd.f32 %v888_v57, %v881_v0  ;;  %v880_v5 = vadd.f32 %v871_v1, %v788_v63 }
 0x29e   : > { %vm893_vm6 = vcmp.gt.f32.partialorder %v891_v4, 0.0  ;;  %v903_v6 = vmul.f32 %v900_v58, %v891_v4  ;;  %v890_v7 = vadd.f32 %v884_v51, %v880_v5 }
 0x2a0   : > { %vm892_vm7 = vcmp.gt.f32.partialorder %v890_v7, 0.0  ;;  %v902_v9 = vmul.f32 %v896_v53, %v890_v7  ;;  %v905_v11 = vsel %vm893_vm6, %v891_v4, %v903_v6 }
 0x2a1   : > { %v907_v13 = vadd.f32 %v905_v11, %v613_v8 }
 0x2a2   : > { %v904_v14 = vsel %vm892_vm7, %v890_v7, %v902_v9 }
 0x2a3   : > { %vm909_vm8 = vcmp.gt.f32.partialorder %v907_v13, 0.0  ;;  %v919_v16 = vmul.f32 %v916_v10, %v907_v13  ;;  %v906_v17 = vadd.f32 %v904_v14, %v608_v12 }
 0x2a5   : > { %v921_v18 = vsel %vm909_vm8, %v907_v13, %v919_v16  ;;  %vm908_vm9 = vcmp.gt.f32.partialorder %v906_v17, 0.0  ;;  %v918_v19 = vmul.f32 %v912_v15, %v906_v17 }
 0x2a6   : > { %923 = vst [vmem:[%s215_s14 + $0x8] sm:$0xff] %v921_v18 }
 0x2a7   : > { %v920_v20 = vsel %vm908_vm9, %v906_v17, %v918_v19 }
 0x2a8   : > { %922 = vst [vmem:[%s215_s14] sm:$0xff] %v920_v20 }
 0x2a9   : > { %1175 = shalt.err (!%p1172_p3)
}
 0x2aa   : > { %s1176_s8 = scalar_lea.hbm %s1440_s30, 256  ;;  %s1180_s11 = scalar_lea.hbm %s1489_s5, 1024 }
 0x2ab   : > { %p1177_p4 = scmp.ne.s32.totalorder %s1440_s30, %s1176_s8  ;;  %p1181_p9 = scmp.lt.s32.totalorder %s1440_s30, %s1489_s5 }
 0x2ac   : > { %p1182_p10 = scmp.lt.s32.totalorder %s1180_s11, %s1176_s8 }
 0x2ad   : > { %p1178_p7 = pnand %p1177_p4, %p1304_p5 }
 0x2ae   : > { %p1183_p11 = por %p1182_p10, %p1181_p9 }
 0x2af   : > { %p1179_p8 = pneg %p1178_p7 }
 0x2b1   : > { %p1184_p12 = pnand %p1183_p11, %p1179_p8 }
 0x2b3   : > { %1187 = shalt.err (!%p1184_p12)
}
 0x2b4   : > { %s1233_s14 = smov 128   ;;  %s1234_s16 = smov 512  }
 0x2b5   : > { %s1235_s17 = smov 8  }
 0x2b6   : > { %1102 = dma.vmem_to_hbm [thread:$0]  (%p1304_p5), %s1435_s15, 256, %s1440_s30, %s1444_s22, %s1233_s14, %s1234_s16, %s1235_s17  }
 0x2b7 PF: > { %p1108_p13 = scmp.ge.s32.totalorder %s1222_s21, 2  ;;  %s952_s26 = sand.u32 1, %s1210_s18  }
 0x2b8   : > { %s953_s23 = scalar_lea.sflag [#allocation3], %s952_s26 }
 0x2b9   : > { %p1105_p0 = pnand %p1108_p13, %p1308_p6 }
 0x2bb   : > { %p1106_p1 = pneg %p1105_p0 }
 0x2bd   : > { %1205 = dma.done.wait (%p1106_p1), %s953_s23, 256  }
 0x2be   : > { %1207 = vsyncadd (%p1106_p1), %s953_s23, 4294967040  ;;  %p15_p2 = scmp.ge.s32.totalorder %s1291_s24, 6   ;;  %s1492_s18 = smov %s1214_s19 }
 0x2bf   : > { %s1493_s19 = smov %s1218_s20  ;;  %s1494_s20 = smov %s1302_s27 }
 0x2c0   : > { %s1495_s21 = smov %s1291_s24  ;;  %17 = sbr.rel (!%p15_p2) target bundleno = 3 (0x3), region = 79 }
 0x2c5   :  { %958 = vsyncpa [#allocation3], 1 }
 0x2c6   :  { %960 = vsyncpa [#allocation3 + $0x1], 1 }

</bundles_post_ra>
